<compile_context>
chip_gen: v7x
topology: tpu7x:2x2x1
jax: 0.10.0
libtpu: 0.0.40
codegen_flags: <defaults>
</compile_context>

<pallas_src>
import functools

import jax
import jax.numpy as jnp
import numpy as np
from jax import lax
from jax.experimental import pallas as pl
from jax.experimental.pallas import tpu as pltpu

LOG_EPS = float(np.log(1e-20))   # matches torch: log(prob.clamp(min=1e-20))
NEG_INF = -1e30                  # finite "-inf" sentinel keeps exp/max arithmetic finite


def _round_up(x, m):
    return ((x + m - 1) // m) * m


def _cdiv(a, b):
    return -(-a // b)


def _dpo_kernel(ids_smem,                 # (n_tiles*2*tm,) i32  scalar prefetch (SMEM)
                ids_ref,                  # (2*tm, 1) i32        VMEM block
                emb_ref,                  # (V, 2*D) f32         VMEM-resident [emb_p | emb_r]
                wp_ref, bp_ref,           # (D, tv), (1, tv)     policy head chunk
                wr_ref, br_ref,           # (D, tv), (1, tv)     reference head chunk
                out_ref,                  # (1, 8, 128) f32      per-core partial loss sum
                x_sc,                     # (2*tm, 2*D) f32      gathered embeddings
                m_sc, s_sc, sel_sc,       # (2, 2*tm, 1) f32     streaming-LSE state
                *, beta, tm, d_model, tv, v_real, v_pad, n_tokens, tiles_per_core):
    c = pl.program_id(0)           # core
    i = pl.program_id(1)           # row tile within core
    j = pl.program_id(2)           # vocab chunk
    nj = pl.num_programs(2)
    two_tm = 2 * tm
    row_tile = c * tiles_per_core + i

    # ---- new row tile: gather embedding rows + reset streaming-LSE state ----------
    @pl.when(j == 0)
    def _():
        base = row_tile * two_tm

        def gather_row(r, carry):
            t = ids_smem[base + r]
            x_sc[pl.ds(r, 1), :] = emb_ref[pl.ds(t, 1), :]
            return carry

        lax.fori_loop(0, two_tm, gather_row, 0)

        m_sc[...] = jnp.full_like(m_sc, NEG_INF)
        s_sc[...] = jnp.zeros_like(s_sc)
        sel_sc[...] = jnp.zeros_like(sel_sc)

    # ---- init this core's partial-sum output block once ---------------------------
    @pl.when((i == 0) & (j == 0))
    def _():
        out_ref[...] = jnp.zeros_like(out_ref)

    # ---- one vocab chunk: project + streaming max / sum-exp / selected-logit ------
    ids = ids_ref[...]                                                   # (2tm, 1)
    col = j * tv + lax.broadcasted_iota(jnp.int32, (two_tm, tv), 1)      # global cols
    tok_mask = col == ids                                                # real cols only
    w_dtype = wp_ref.dtype

    def update(midx, xm, w_ref, b_ref):
        logits = jnp.dot(xm.astype(w_dtype), w_ref[...],
                         preferred_element_type=jnp.float32) + b_ref[...]
        if v_real < v_pad:                          # mask padded vocab columns
            logits = jnp.where(col < v_real, logits, NEG_INF)
        m_prev = m_sc[midx]
        s_prev = s_sc[midx]
        m_new = jnp.maximum(m_prev, jnp.max(logits, axis=-1, keepdims=True))
        s_new = s_prev * jnp.exp(m_prev - m_new) + jnp.sum(
            jnp.exp(logits - m_new), axis=-1, keepdims=True)
        sel_add = jnp.sum(jnp.where(tok_mask, logits, 0.0), axis=-1, keepdims=True)
        m_sc[midx] = m_new
        s_sc[midx] = s_new
        sel_sc[midx] = sel_sc[midx] + sel_add

    update(0, x_sc[:, :d_model], wp_ref, bp_ref)    # policy model
    update(1, x_sc[:, d_model:], wr_ref, br_ref)    # reference model

    # ---- last vocab chunk: finish log-probs, DPO loss, accumulate partial sum -----
    @pl.when(j == nj - 1)
    def _():
        lp_pol = jnp.maximum(sel_sc[0] - (m_sc[0] + jnp.log(s_sc[0])), LOG_EPS)
        lp_ref = jnp.maximum(sel_sc[1] - (m_sc[1] + jnp.log(s_sc[1])), LOG_EPS)
        policy_logratios = lp_pol[:tm] - lp_pol[tm:]
        ref_logratios = lp_ref[:tm] - lp_ref[tm:]
        z = beta * (policy_logratios - ref_logratios)
        # loss = -logsigmoid(z) = softplus(-z), numerically stable form:
        loss = jnp.maximum(-z, 0.0) + jnp.log1p(jnp.exp(-jnp.abs(z)))    # (tm, 1)

        row = row_tile * tm + lax.broadcasted_iota(jnp.int32, (tm, 1), 0)
        valid = (row < n_tokens).astype(jnp.float32)
        tile_sum = jnp.sum(loss * valid, keepdims=True)                  # (1, 1)
        out_ref[...] += jnp.broadcast_to(tile_sum.reshape(1, 1, 1), out_ref.shape)


def dpo_forward(policy_params, ref_params, preferred_seq, unpreferred_seq, *,
                beta=0.1, tm=256, tv=512, num_cores=1, use_bf16=False):
    """DPO.forward — returns the scalar mean loss.

    num_cores: set to 2 on v7x (megacore) to shard row tiles across both TensorCores.
    use_bf16 : bf16 matmul operands for the vocab projections (MXU native rate).
    """
    assert preferred_seq.ndim == 2
    assert preferred_seq.shape == unpreferred_seq.shape
    assert num_cores >= 1
    B, T = preferred_seq.shape
    n = B * T

    emb_p, w_p, b_p = policy_params
    emb_r, w_r, b_r = ref_params
    V, D = emb_p.shape
    assert emb_r.shape == (V, D)
    assert w_p.shape == (D, V) and w_r.shape == (D, V)

    # ---- row tiling (preferred + unpreferred stacked along M -> 2*tm rows/tile) ----
    tm_eff = max(8, min(_round_up(int(tm), 8), _round_up(n, 8)))
    row_tiles = _cdiv(n, tm_eff)
    tiles_per_core = _cdiv(row_tiles, num_cores)
    n_tiles = tiles_per_core * num_cores
    n_pad = n_tiles * tm_eff

    # ---- vocab tiling (streaming-LSE chunks) ---------------------------------------
    tv_eff = max(128, min(_round_up(int(tv), 128), _round_up(V, 128)))
    v_pad = _round_up(V, tv_eff)
    v_tiles = v_pad // tv_eff

    pref = jnp.pad(preferred_seq.reshape(n).astype(jnp.int32), (0, n_pad - n))
    unpref = jnp.pad(unpreferred_seq.reshape(n).astype(jnp.int32), (0, n_pad - n))
    # Per-tile row layout: [preferred tile i (tm rows) | unpreferred tile i (tm rows)].
    ids = jnp.stack([pref.reshape(n_tiles, tm_eff),
                     unpref.reshape(n_tiles, tm_eff)], axis=1).reshape(-1)
    ids_col = ids.reshape(-1, 1)      # tiny lane-sparse VMEM copy for the select mask

    w_dtype = jnp.bfloat16 if use_bf16 else jnp.float32
    emb_cat = jnp.concatenate(
        [emb_p.astype(jnp.float32), emb_r.astype(jnp.float32)], axis=1)   # (V, 2D)

    def pad_head(w, b):
        wpad = jnp.pad(w.astype(w_dtype), ((0, 0), (0, v_pad - V)))
        bpad = jnp.pad(b.reshape(1, V).astype(jnp.float32), ((0, 0), (0, v_pad - V)))
        return wpad, bpad

    wpp, bpp = pad_head(w_p, b_p)
    wrp, brp = pad_head(w_r, b_r)

    # ---- VMEM budget derived from the actual blocks (32 MiB floor, 56 MiB ceiling:
    #      the same config must still compile on v7x's 64 MiB VMEM) -------------------
    wbytes = 2 if use_bf16 else 4
    est = (V * 2 * D * 4 * 2                          # emb_cat (assume double-buffered)
           + 2 * D * tv_eff * wbytes * 2              # w chunks (policy + ref), 2 buffers
           + 2 * tv_eff * 4 * 2                       # bias chunks
           + 2 * tm_eff * 128 * 4 * 2                 # ids block (lane padded)
           + 8 * 128 * 4 * 2                          # out block
           + 2 * tm_eff * 2 * D * 4                   # gathered-x scratch
           + 3 * 2 * 2 * tm_eff * 128 * 4             # m/s/sel scratch (lane padded)
           + 2 * 2 * tm_eff * tv_eff * 4 * 3)         # logits + exp temporaries
    vmem_limit = int(min(max(est * 3 // 2, 32 * 1024 * 1024), 56 * 1024 * 1024))

    kernel = functools.partial(
        _dpo_kernel, beta=float(beta), tm=tm_eff, d_model=D, tv=tv_eff,
        v_real=V, v_pad=v_pad, n_tokens=n, tiles_per_core=tiles_per_core)

    ids_map = lambda c, i, j, _ids: (c * tiles_per_core + i, 0)
    const_map = lambda c, i, j, _ids: (0, 0)
    vchunk_map = lambda c, i, j, _ids: (0, j)

    out = pl.pallas_call(
        kernel,
        out_shape=jax.ShapeDtypeStruct((num_cores, 8, 128), jnp.float32),
        grid_spec=pltpu.PrefetchScalarGridSpec(
            num_scalar_prefetch=1,
            grid=(num_cores, tiles_per_core, v_tiles),
            in_specs=[
                pl.BlockSpec((2 * tm_eff, 1), ids_map),     # token ids (VMEM, select mask)
                pl.BlockSpec((V, 2 * D), const_map),        # [emb_policy | emb_ref], resident
                pl.BlockSpec((D, tv_eff), vchunk_map),      # w_policy vocab chunk
                pl.BlockSpec((1, tv_eff), vchunk_map),      # b_policy vocab chunk
                pl.BlockSpec((D, tv_eff), vchunk_map),      # w_ref vocab chunk
                pl.BlockSpec((1, tv_eff), vchunk_map),      # b_ref vocab chunk
            ],
            out_specs=pl.BlockSpec((1, 8, 128), lambda c, i, j, _ids: (c, 0, 0)),
            scratch_shapes=[
                pltpu.VMEM((2 * tm_eff, 2 * D), jnp.float32),    # gathered embeddings
                pltpu.VMEM((2, 2 * tm_eff, 1), jnp.float32),     # running max (per model)
                pltpu.VMEM((2, 2 * tm_eff, 1), jnp.float32),     # running sum-exp
                pltpu.VMEM((2, 2 * tm_eff, 1), jnp.float32),     # selected logit
            ]),
        compiler_params=pltpu.CompilerParams(
            dimension_semantics=("parallel", "arbitrary", "arbitrary"),
            vmem_limit_bytes=vmem_limit),
    )(ids, ids_col, emb_cat, wpp, bpp, wrp, brp)

    return jnp.sum(out[:, 0, 0]) / n


def _dpo_reference(policy_params, ref_params, pref, unpref, *, beta=0.1):
    """Pure-JAX reference mirroring the PyTorch code, for validation."""
    def logprob(params, seq):
        emb, w, b = params
        x = emb[seq]                                                     # (B, T, D)
        logits = jnp.matmul(x, w, precision=jax.lax.Precision.HIGHEST) + b
        prob = jax.nn.softmax(logits, axis=-1)
        p = jnp.take_along_axis(prob, seq[..., None], axis=-1)[..., 0]
        return jnp.log(jnp.maximum(p, 1e-20))

    pp = logprob(policy_params, pref)
    pu = logprob(policy_params, unpref)
    rp = logprob(ref_params, pref)
    ru = logprob(ref_params, unpref)
    z = beta * ((pp - pu) - (rp - ru))
    return jnp.mean(-jax.nn.log_sigmoid(z))


if __name__ == "__main__":
    beta = 0.1
    key = jax.random.PRNGKey(0)
    keys = jax.random.split(key, 14)

    # Case 1: toy shapes, policy == reference (deepcopy), single tile, f32 path.
    B, T, D, V = 2, 8, 32, 128
    emb = jax.random.normal(keys[0], (V, D), dtype=jnp.float32) * 0.1
    w = jax.random.normal(keys[1], (D, V), dtype=jnp.float32) * 0.1
    b = jax.random.normal(keys[2], (V,), dtype=jnp.float32) * 0.01
    policy = (emb, w, b)
    ref = (emb, w, b)
    pref = jax.random.randint(keys[3], (B, T), 0, V, dtype=jnp.int32)
    unpref = jax.random.randint(keys[4], (B, T), 0, V, dtype=jnp.int32)

    loss = jax.block_until_ready(dpo_forward(policy, ref, pref, unpref, beta=beta))
    want = _dpo_reference(policy, ref, pref, unpref, beta=beta)
    assert np.allclose(np.asarray(loss), np.asarray(want), rtol=1e-4, atol=1e-4), (loss, want)

    # Case 2: diverged policy vs reference, n=120 not a multiple of tm=32, V=200
    # padded into two 128-wide vocab chunks (masked tail), and the 2-core grid split.
    B2, T2, V2 = 3, 40, 200
    emb_p2 = jax.random.normal(keys[5], (V2, D), dtype=jnp.float32) * 0.1
    w_p2 = jax.random.normal(keys[6], (D, V2), dtype=jnp.float32) * 0.1
    b_p2 = jax.random.normal(keys[7], (V2,), dtype=jnp.float32) * 0.01
    emb_r2 = emb_p2 + 0.05 * jax.random.normal(keys[8], (V2, D), dtype=jnp.float32)
    w_r2 = w_p2 + 0.05 * jax.random.normal(keys[9], (D, V2), dtype=jnp.float32)
    b_r2 = b_p2 + 0.01 * jax.random.normal(keys[10], (V2,), dtype=jnp.float32)
    policy2 = (emb_p2, w_p2, b_p2)
    ref2 = (emb_r2, w_r2, b_r2)
    pref2 = jax.random.randint(keys[11], (B2, T2), 0, V2, dtype=jnp.int32)
    unpref2 = jax.random.randint(keys[12], (B2, T2), 0, V2, dtype=jnp.int32)

    loss2 = jax.block_until_ready(
        dpo_forward(policy2, ref2, pref2, unpref2, beta=beta,
                    tm=32, tv=128, num_cores=2))
    want2 = _dpo_reference(policy2, ref2, pref2, unpref2, beta=beta)
    assert np.allclose(np.asarray(loss2), np.asarray(want2), rtol=1e-4, atol=1e-4), (loss2, want2)

    # Case 3: bf16 matmul operands (MXU native rate); looser tolerance vs f32 reference.
    loss3 = jax.block_until_ready(
        dpo_forward(policy2, ref2, pref2, unpref2, beta=beta,
                    tm=32, tv=128, use_bf16=True))
    assert np.allclose(np.asarray(loss3), np.asarray(want2), rtol=5e-3, atol=5e-3), (loss3, want2)

    print("KERNEL_OK")
</pallas_src>

<mosaic_0001>
module attributes {stable_mosaic.version = 11 : i64} {
  func.func @_dpo_kernel(%arg0: i32, %arg1: i32, %arg2: i32, %arg3: memref<32xi32, #tpu.memory_space<smem>>, %arg4: memref<32x1xi32, #tpu.memory_space<vmem>>, %arg5: memref<128x64xf32, #tpu.memory_space<vmem>>, %arg6: memref<32x128xf32, #tpu.memory_space<vmem>>, %arg7: memref<1x128xf32, #tpu.memory_space<vmem>>, %arg8: memref<32x128xf32, #tpu.memory_space<vmem>>, %arg9: memref<1x128xf32, #tpu.memory_space<vmem>>, %arg10: memref<1x8x128xf32, #tpu.memory_space<vmem>>, %arg11: memref<32x64xf32, #tpu.memory_space<vmem>>, %arg12: memref<2x32x1xf32, #tpu.memory_space<vmem>>, %arg13: memref<2x32x1xf32, #tpu.memory_space<vmem>>, %arg14: memref<2x32x1xf32, #tpu.memory_space<vmem>>) attributes {dimension_semantics = [#tpu.dimension_semantics<parallel>, #tpu.dimension_semantics<arbitrary>, #tpu.dimension_semantics<arbitrary>], iteration_bounds = array<i64: 1, 1, 1>, scalar_prefetch = 1 : i64, scratch_operands = 4 : i64, tpu.core_type = #tpu.core_type<tc>, window_params = [{transform_indices = @transform_0, window_bounds = array<i64: 32, 1>}, {pipeline_mode = #tpu.pipeline_mode<synchronous>, transform_indices = @transform_1, window_bounds = array<i64: 128, 64>}, {transform_indices = @transform_2, window_bounds = array<i64: 32, 128>}, {transform_indices = @transform_3, window_bounds = array<i64: 1, 128>}, {transform_indices = @transform_4, window_bounds = array<i64: 32, 128>}, {transform_indices = @transform_5, window_bounds = array<i64: 1, 128>}, {transform_indices = @transform_6, window_bounds = array<i64: 1, 8, 128>}]} {
    %c1_i32 = arith.constant 1 : i32
    %0 = arith.muli %arg0, %c1_i32 : i32
    %1 = arith.addi %0, %arg1 : i32
    %c0_i32 = arith.constant 0 : i32
    %2 = arith.cmpi eq, %arg2, %c0_i32 : i32
    %3 = arith.extui %2 : i1 to i32
    %c0_i32_0 = arith.constant 0 : i32
    %4 = arith.cmpi ne, %3, %c0_i32_0 : i32
    scf.if %4 {
      %c32_i32 = arith.constant 32 : i32
      %96 = arith.muli %1, %c32_i32 : i32
      %c0_i32_62 = arith.constant 0 : i32
      %c32_i32_63 = arith.constant 32 : i32
      %97 = arith.addi %c0_i32_62, %c32_i32_63 : i32
      %c1_i32_64 = arith.constant 1 : i32
      scf.for %arg15 = %c0_i32_62 to %97 step %c1_i32_64  : i32 {
        %104 = arith.addi %96, %arg15 : i32
        %105 = arith.index_cast %104 : i32 to index
        %106 = memref.load %arg3[%105] : memref<32xi32, #tpu.memory_space<smem>>
        %107 = arith.index_cast %106 : i32 to index
        %c0_78 = arith.constant 0 : index
        %108 = vector.load %arg5[%107, %c0_78] : memref<128x64xf32, #tpu.memory_space<vmem>>, vector<1x64xf32>
        %109 = arith.index_cast %arg15 : i32 to index
        %c0_79 = arith.constant 0 : index
        %110 = vector.load %arg11[%109, %c0_79] : memref<32x64xf32, #tpu.memory_space<vmem>>, vector<1x64xf32>
        tpu.vector_store %arg11[%109, %c0_79], %108 {strides = array<i32>} : memref<32x64xf32, #tpu.memory_space<vmem>>, vector<1x64xf32>,
      }
      %c32_i32_65 = arith.constant 32 : i32
      %cst_66 = arith.constant -1.000000e+30 : f32
      %98 = vector.broadcast %cst_66 : f32 to vector<2x32x1xf32>
      %c0_67 = arith.constant 0 : index
      %c0_68 = arith.constant 0 : index
      %c0_69 = arith.constant 0 : index
      %99 = vector.load %arg12[%c0_67, %c0_68, %c0_69] : memref<2x32x1xf32, #tpu.memory_space<vmem>>, vector<2x32x1xf32>
      tpu.vector_store %arg12[%c0_67, %c0_68, %c0_69], %98 {strides = array<i32>} : memref<2x32x1xf32, #tpu.memory_space<vmem>>, vector<2x32x1xf32>,
      %cst_70 = arith.constant 0.000000e+00 : f32
      %100 = vector.broadcast %cst_70 : f32 to vector<2x32x1xf32>
      %c0_71 = arith.constant 0 : index
      %c0_72 = arith.constant 0 : index
      %c0_73 = arith.constant 0 : index
      %101 = vector.load %arg13[%c0_71, %c0_72, %c0_73] : memref<2x32x1xf32, #tpu.memory_space<vmem>>, vector<2x32x1xf32>
      tpu.vector_store %arg13[%c0_71, %c0_72, %c0_73], %100 {strides = array<i32>} : memref<2x32x1xf32, #tpu.memory_space<vmem>>, vector<2x32x1xf32>,
      %cst_74 = arith.constant 0.000000e+00 : f32
      %102 = vector.broadcast %cst_74 : f32 to vector<2x32x1xf32>
      %c0_75 = arith.constant 0 : index
      %c0_76 = arith.constant 0 : index
      %c0_77 = arith.constant 0 : index
      %103 = vector.load %arg14[%c0_75, %c0_76, %c0_77] : memref<2x32x1xf32, #tpu.memory_space<vmem>>, vector<2x32x1xf32>
      tpu.vector_store %arg14[%c0_75, %c0_76, %c0_77], %102 {strides = array<i32>} : memref<2x32x1xf32, #tpu.memory_space<vmem>>, vector<2x32x1xf32>,
    } else {
    }
    %c0_i32_1 = arith.constant 0 : i32
    %5 = arith.cmpi eq, %arg1, %c0_i32_1 : i32
    %c0_i32_2 = arith.constant 0 : i32
    %6 = arith.cmpi eq, %arg2, %c0_i32_2 : i32
    %7 = arith.andi %5, %6 : i1
    %8 = arith.extui %7 : i1 to i32
    %c0_i32_3 = arith.constant 0 : i32
    %9 = arith.cmpi ne, %8, %c0_i32_3 : i32
    scf.if %9 {
      %cst_62 = arith.constant 0.000000e+00 : f32
      %96 = vector.broadcast %cst_62 : f32 to vector<1x8x128xf32>
      %c0_63 = arith.constant 0 : index
      %c0_64 = arith.constant 0 : index
      %c0_65 = arith.constant 0 : index
      %97 = vector.load %arg10[%c0_63, %c0_64, %c0_65] : memref<1x8x128xf32, #tpu.memory_space<vmem>>, vector<1x8x128xf32>
      tpu.vector_store %arg10[%c0_63, %c0_64, %c0_65], %96 {strides = array<i32>} : memref<1x8x128xf32, #tpu.memory_space<vmem>>, vector<1x8x128xf32>,
    } else {
    }
    %c0 = arith.constant 0 : index
    %c0_4 = arith.constant 0 : index
    %10 = vector.load %arg4[%c0, %c0_4] : memref<32x1xi32, #tpu.memory_space<vmem>>, vector<32x1xi32>
    %c128_i32 = arith.constant 128 : i32
    %11 = arith.muli %arg2, %c128_i32 : i32
    %12 = tpu.iota {dimensions = array<i32: 1>} : vector<32x128xi32>
    %13 = vector.broadcast %11 : i32 to vector<32x128xi32>
    %14 = arith.addi %13, %12 : vector<32x128xi32>
    %15 = vector.broadcast %10 : vector<32x1xi32> to vector<32x128xi32>
    %16 = arith.cmpi eq, %14, %15 : vector<32x128xi32>
    %c0_5 = arith.constant 0 : index
    %c0_6 = arith.constant 0 : index
    %17 = vector.load %arg11[%c0_5, %c0_6] : memref<32x64xf32, #tpu.memory_space<vmem>>, vector<32x32xf32>
    %c0_7 = arith.constant 0 : index
    %c0_8 = arith.constant 0 : index
    %18 = vector.load %arg6[%c0_7, %c0_8] : memref<32x128xf32, #tpu.memory_space<vmem>>, vector<32x128xf32>
    %cst = arith.constant dense<0.000000e+00> : vector<32x128xf32>
    %19 = tpu.matmul %17, %18, %cst {dimension_numbers = #tpu.dot_dimension_numbers<[1], [0], [0], [1], [0, 0, 1, 1], [], []>} : vector<32x32xf32>, vector<32x128xf32>, vector<32x128xf32> -> vector<32x128xf32>
    %c0_9 = arith.constant 0 : index
    %c0_10 = arith.constant 0 : index
    %20 = vector.load %arg7[%c0_9, %c0_10] : memref<1x128xf32, #tpu.memory_space<vmem>>, vector<1x128xf32>
    %21 = vector.broadcast %20 : vector<1x128xf32> to vector<32x128xf32>
    %22 = arith.addf %19, %21 : vector<32x128xf32>
    %c0_11 = arith.constant 0 : index
    %c0_12 = arith.constant 0 : index
    %c0_13 = arith.constant 0 : index
    %23 = vector.load %arg12[%c0_11, %c0_12, %c0_13] : memref<2x32x1xf32, #tpu.memory_space<vmem>>, vector<1x32x1xf32>
    %24 = vector.shape_cast %23 : vector<1x32x1xf32> to vector<32x1xf32>
    %c0_14 = arith.constant 0 : index
    %c0_15 = arith.constant 0 : index
    %c0_16 = arith.constant 0 : index
    %25 = vector.load %arg13[%c0_14, %c0_15, %c0_16] : memref<2x32x1xf32, #tpu.memory_space<vmem>>, vector<1x32x1xf32>
    %26 = vector.shape_cast %25 : vector<1x32x1xf32> to vector<32x1xf32>
    %cst_17 = arith.constant dense<0xFF800000> : vector<32xf32>
    %27 = vector.multi_reduction <maximumf>, %22, %cst_17 [1] : vector<32x128xf32> to vector<32xf32>
    %28 = vector.shape_cast %27 : vector<32xf32> to vector<32x1xf32>
    %29 = arith.maximumf %24, %28 : vector<32x1xf32>
    %30 = arith.subf %24, %29 : vector<32x1xf32>
    %31 = math.exp %30 : vector<32x1xf32>
    %32 = arith.mulf %26, %31 : vector<32x1xf32>
    %33 = vector.broadcast %29 : vector<32x1xf32> to vector<32x128xf32>
    %34 = arith.subf %22, %33 : vector<32x128xf32>
    %35 = math.exp %34 : vector<32x128xf32>
    %cst_18 = arith.constant dense<0.000000e+00> : vector<32xf32>
    %36 = vector.multi_reduction <add>, %35, %cst_18 [1] : vector<32x128xf32> to vector<32xf32>
    %37 = vector.shape_cast %36 : vector<32xf32> to vector<32x1xf32>
    %38 = arith.addf %32, %37 : vector<32x1xf32>
    %cst_19 = arith.constant 0.000000e+00 : f32
    %39 = vector.broadcast %cst_19 : f32 to vector<32x128xf32>
    %40 = arith.select %16, %22, %39 : vector<32x128xi1>, vector<32x128xf32>
    %cst_20 = arith.constant dense<0.000000e+00> : vector<32xf32>
    %41 = vector.multi_reduction <add>, %40, %cst_20 [1] : vector<32x128xf32> to vector<32xf32>
    %42 = vector.shape_cast %41 : vector<32xf32> to vector<32x1xf32>
    %c0_21 = arith.constant 0 : index
    %c0_22 = arith.constant 0 : index
    %c0_23 = arith.constant 0 : index
    %43 = vector.load %arg12[%c0_21, %c0_22, %c0_23] : memref<2x32x1xf32, #tpu.memory_space<vmem>>, vector<1x32x1xf32>
    %44 = vector.shape_cast %43 : vector<1x32x1xf32> to vector<32x1xf32>
    %45 = vector.shape_cast %29 : vector<32x1xf32> to vector<1x32x1xf32>
    tpu.vector_store %arg12[%c0_21, %c0_22, %c0_23], %45 {strides = array<i32>} : memref<2x32x1xf32, #tpu.memory_space<vmem>>, vector<1x32x1xf32>,
    %c0_24 = arith.constant 0 : index
    %c0_25 = arith.constant 0 : index
    %c0_26 = arith.constant 0 : index
    %46 = vector.load %arg13[%c0_24, %c0_25, %c0_26] : memref<2x32x1xf32, #tpu.memory_space<vmem>>, vector<1x32x1xf32>
    %47 = vector.shape_cast %46 : vector<1x32x1xf32> to vector<32x1xf32>
    %48 = vector.shape_cast %38 : vector<32x1xf32> to vector<1x32x1xf32>
    tpu.vector_store %arg13[%c0_24, %c0_25, %c0_26], %48 {strides = array<i32>} : memref<2x32x1xf32, #tpu.memory_space<vmem>>, vector<1x32x1xf32>,
    %c0_27 = arith.constant 0 : index
    %c0_28 = arith.constant 0 : index
    %c0_29 = arith.constant 0 : index
    %49 = vector.load %arg14[%c0_27, %c0_28, %c0_29] : memref<2x32x1xf32, #tpu.memory_space<vmem>>, vector<1x32x1xf32>
    %50 = vector.shape_cast %49 : vector<1x32x1xf32> to vector<32x1xf32>
    %51 = arith.addf %50, %42 : vector<32x1xf32>
    %c0_30 = arith.constant 0 : index
    %c0_31 = arith.constant 0 : index
    %c0_32 = arith.constant 0 : index
    %52 = vector.load %arg14[%c0_30, %c0_31, %c0_32] : memref<2x32x1xf32, #tpu.memory_space<vmem>>, vector<1x32x1xf32>
    %53 = vector.shape_cast %52 : vector<1x32x1xf32> to vector<32x1xf32>
    %54 = vector.shape_cast %51 : vector<32x1xf32> to vector<1x32x1xf32>
    tpu.vector_store %arg14[%c0_30, %c0_31, %c0_32], %54 {strides = array<i32>} : memref<2x32x1xf32, #tpu.memory_space<vmem>>, vector<1x32x1xf32>,
    %c0_33 = arith.constant 0 : index
    %c32 = arith.constant 32 : index
    %55 = vector.load %arg11[%c0_33, %c32] : memref<32x64xf32, #tpu.memory_space<vmem>>, vector<32x32xf32>
    %c0_34 = arith.constant 0 : index
    %c0_35 = arith.constant 0 : index
    %56 = vector.load %arg8[%c0_34, %c0_35] : memref<32x128xf32, #tpu.memory_space<vmem>>, vector<32x128xf32>
    %cst_36 = arith.constant dense<0.000000e+00> : vector<32x128xf32>
    %57 = tpu.matmul %55, %56, %cst_36 {dimension_numbers = #tpu.dot_dimension_numbers<[1], [0], [0], [1], [0, 0, 1, 1], [], []>} : vector<32x32xf32>, vector<32x128xf32>, vector<32x128xf32> -> vector<32x128xf32>
    %c0_37 = arith.constant 0 : index
    %c0_38 = arith.constant 0 : index
    %58 = vector.load %arg9[%c0_37, %c0_38] : memref<1x128xf32, #tpu.memory_space<vmem>>, vector<1x128xf32>
    %59 = vector.broadcast %58 : vector<1x128xf32> to vector<32x128xf32>
    %60 = arith.addf %57, %59 : vector<32x128xf32>
    %c1 = arith.constant 1 : index
    %c0_39 = arith.constant 0 : index
    %c0_40 = arith.constant 0 : index
    %61 = vector.load %arg12[%c1, %c0_39, %c0_40] : memref<2x32x1xf32, #tpu.memory_space<vmem>>, vector<1x32x1xf32>
    %62 = vector.shape_cast %61 : vector<1x32x1xf32> to vector<32x1xf32>
    %c1_41 = arith.constant 1 : index
    %c0_42 = arith.constant 0 : index
    %c0_43 = arith.constant 0 : index
    %63 = vector.load %arg13[%c1_41, %c0_42, %c0_43] : memref<2x32x1xf32, #tpu.memory_space<vmem>>, vector<1x32x1xf32>
    %64 = vector.shape_cast %63 : vector<1x32x1xf32> to vector<32x1xf32>
    %cst_44 = arith.constant dense<0xFF800000> : vector<32xf32>
    %65 = vector.multi_reduction <maximumf>, %60, %cst_44 [1] : vector<32x128xf32> to vector<32xf32>
    %66 = vector.shape_cast %65 : vector<32xf32> to vector<32x1xf32>
    %67 = arith.maximumf %62, %66 : vector<32x1xf32>
    %68 = arith.subf %62, %67 : vector<32x1xf32>
    %69 = math.exp %68 : vector<32x1xf32>
    %70 = arith.mulf %64, %69 : vector<32x1xf32>
    %71 = vector.broadcast %67 : vector<32x1xf32> to vector<32x128xf32>
    %72 = arith.subf %60, %71 : vector<32x128xf32>
    %73 = math.exp %72 : vector<32x128xf32>
    %cst_45 = arith.constant dense<0.000000e+00> : vector<32xf32>
    %74 = vector.multi_reduction <add>, %73, %cst_45 [1] : vector<32x128xf32> to vector<32xf32>
    %75 = vector.shape_cast %74 : vector<32xf32> to vector<32x1xf32>
    %76 = arith.addf %70, %75 : vector<32x1xf32>
    %cst_46 = arith.constant 0.000000e+00 : f32
    %77 = vector.broadcast %cst_46 : f32 to vector<32x128xf32>
    %78 = arith.select %16, %60, %77 : vector<32x128xi1>, vector<32x128xf32>
    %cst_47 = arith.constant dense<0.000000e+00> : vector<32xf32>
    %79 = vector.multi_reduction <add>, %78, %cst_47 [1] : vector<32x128xf32> to vector<32xf32>
    %80 = vector.shape_cast %79 : vector<32xf32> to vector<32x1xf32>
    %c1_48 = arith.constant 1 : index
    %c0_49 = arith.constant 0 : index
    %c0_50 = arith.constant 0 : index
    %81 = vector.load %arg12[%c1_48, %c0_49, %c0_50] : memref<2x32x1xf32, #tpu.memory_space<vmem>>, vector<1x32x1xf32>
    %82 = vector.shape_cast %81 : vector<1x32x1xf32> to vector<32x1xf32>
    %83 = vector.shape_cast %67 : vector<32x1xf32> to vector<1x32x1xf32>
    tpu.vector_store %arg12[%c1_48, %c0_49, %c0_50], %83 {strides = array<i32>} : memref<2x32x1xf32, #tpu.memory_space<vmem>>, vector<1x32x1xf32>,
    %c1_51 = arith.constant 1 : index
    %c0_52 = arith.constant 0 : index
    %c0_53 = arith.constant 0 : index
    %84 = vector.load %arg13[%c1_51, %c0_52, %c0_53] : memref<2x32x1xf32, #tpu.memory_space<vmem>>, vector<1x32x1xf32>
    %85 = vector.shape_cast %84 : vector<1x32x1xf32> to vector<32x1xf32>
    %86 = vector.shape_cast %76 : vector<32x1xf32> to vector<1x32x1xf32>
    tpu.vector_store %arg13[%c1_51, %c0_52, %c0_53], %86 {strides = array<i32>} : memref<2x32x1xf32, #tpu.memory_space<vmem>>, vector<1x32x1xf32>,
    %c1_54 = arith.constant 1 : index
    %c0_55 = arith.constant 0 : index
    %c0_56 = arith.constant 0 : index
    %87 = vector.load %arg14[%c1_54, %c0_55, %c0_56] : memref<2x32x1xf32, #tpu.memory_space<vmem>>, vector<1x32x1xf32>
    %88 = vector.shape_cast %87 : vector<1x32x1xf32> to vector<32x1xf32>
    %89 = arith.addf %88, %80 : vector<32x1xf32>
    %c1_57 = arith.constant 1 : index
    %c0_58 = arith.constant 0 : index
    %c0_59 = arith.constant 0 : index
    %90 = vector.load %arg14[%c1_57, %c0_58, %c0_59] : memref<2x32x1xf32, #tpu.memory_space<vmem>>, vector<1x32x1xf32>
    %91 = vector.shape_cast %90 : vector<1x32x1xf32> to vector<32x1xf32>
    %92 = vector.shape_cast %89 : vector<32x1xf32> to vector<1x32x1xf32>
    tpu.vector_store %arg14[%c1_57, %c0_58, %c0_59], %92 {strides = array<i32>} : memref<2x32x1xf32, #tpu.memory_space<vmem>>, vector<1x32x1xf32>,
    %c0_i32_60 = arith.constant 0 : i32
    %93 = arith.cmpi eq, %arg2, %c0_i32_60 : i32
    %94 = arith.extui %93 : i1 to i32
    %c0_i32_61 = arith.constant 0 : i32
    %95 = arith.cmpi ne, %94, %c0_i32_61 : i32
    scf.if %95 {
      %c0_62 = arith.constant 0 : index
      %c0_63 = arith.constant 0 : index
      %c0_64 = arith.constant 0 : index
      %96 = vector.load %arg14[%c0_62, %c0_63, %c0_64] : memref<2x32x1xf32, #tpu.memory_space<vmem>>, vector<1x32x1xf32>
      %97 = vector.shape_cast %96 : vector<1x32x1xf32> to vector<32x1xf32>
      %c0_65 = arith.constant 0 : index
      %c0_66 = arith.constant 0 : index
      %c0_67 = arith.constant 0 : index
      %98 = vector.load %arg12[%c0_65, %c0_66, %c0_67] : memref<2x32x1xf32, #tpu.memory_space<vmem>>, vector<1x32x1xf32>
      %99 = vector.shape_cast %98 : vector<1x32x1xf32> to vector<32x1xf32>
      %c0_68 = arith.constant 0 : index
      %c0_69 = arith.constant 0 : index
      %c0_70 = arith.constant 0 : index
      %100 = vector.load %arg13[%c0_68, %c0_69, %c0_70] : memref<2x32x1xf32, #tpu.memory_space<vmem>>, vector<1x32x1xf32>
      %101 = vector.shape_cast %100 : vector<1x32x1xf32> to vector<32x1xf32>
      %102 = math.log %101 : vector<32x1xf32>
      %103 = arith.addf %99, %102 : vector<32x1xf32>
      %104 = arith.subf %97, %103 : vector<32x1xf32>
      %cst_71 = arith.constant -4.605170e+01 : f32
      %105 = vector.broadcast %cst_71 : f32 to vector<32x1xf32>
      %106 = arith.maximumf %104, %105 : vector<32x1xf32>
      %c1_72 = arith.constant 1 : index
      %c0_73 = arith.constant 0 : index
      %c0_74 = arith.constant 0 : index
      %107 = vector.load %arg14[%c1_72, %c0_73, %c0_74] : memref<2x32x1xf32, #tpu.memory_space<vmem>>, vector<1x32x1xf32>
      %108 = vector.shape_cast %107 : vector<1x32x1xf32> to vector<32x1xf32>
      %c1_75 = arith.constant 1 : index
      %c0_76 = arith.constant 0 : index
      %c0_77 = arith.constant 0 : index
      %109 = vector.load %arg12[%c1_75, %c0_76, %c0_77] : memref<2x32x1xf32, #tpu.memory_space<vmem>>, vector<1x32x1xf32>
      %110 = vector.shape_cast %109 : vector<1x32x1xf32> to vector<32x1xf32>
      %c1_78 = arith.constant 1 : index
      %c0_79 = arith.constant 0 : index
      %c0_80 = arith.constant 0 : index
      %111 = vector.load %arg13[%c1_78, %c0_79, %c0_80] : memref<2x32x1xf32, #tpu.memory_space<vmem>>, vector<1x32x1xf32>
      %112 = vector.shape_cast %111 : vector<1x32x1xf32> to vector<32x1xf32>
      %113 = math.log %112 : vector<32x1xf32>
      %114 = arith.addf %110, %113 : vector<32x1xf32>
      %115 = arith.subf %108, %114 : vector<32x1xf32>
      %cst_81 = arith.constant -4.605170e+01 : f32
      %116 = vector.broadcast %cst_81 : f32 to vector<32x1xf32>
      %117 = arith.maximumf %115, %116 : vector<32x1xf32>
      %118 = vector.extract_strided_slice %106 {offsets = [0, 0], sizes = [16, 1], strides = [1, 1]} : vector<32x1xf32> to vector<16x1xf32>
      %119 = vector.extract_strided_slice %106 {offsets = [16, 0], sizes = [16, 1], strides = [1, 1]} : vector<32x1xf32> to vector<16x1xf32>
      %120 = arith.subf %118, %119 : vector<16x1xf32>
      %121 = vector.extract_strided_slice %117 {offsets = [0, 0], sizes = [16, 1], strides = [1, 1]} : vector<32x1xf32> to vector<16x1xf32>
      %122 = vector.extract_strided_slice %117 {offsets = [16, 0], sizes = [16, 1], strides = [1, 1]} : vector<32x1xf32> to vector<16x1xf32>
      %123 = arith.subf %121, %122 : vector<16x1xf32>
      %124 = arith.subf %120, %123 : vector<16x1xf32>
      %cst_82 = arith.constant 1.000000e-01 : f32
      %125 = vector.broadcast %cst_82 : f32 to vector<16x1xf32>
      %126 = arith.mulf %125, %124 : vector<16x1xf32>
      %cst_83 = arith.constant 0.000000e+00 : f32
      %127 = vector.broadcast %cst_83 : f32 to vector<16x1xf32>
      %128 = arith.subf %127, %126 : vector<16x1xf32>
      %cst_84 = arith.constant 0.000000e+00 : f32
      %129 = vector.broadcast %cst_84 : f32 to vector<16x1xf32>
      %130 = arith.maximumf %128, %129 : vector<16x1xf32>
      %131 = math.absf %126 : vector<16x1xf32>
      %cst_85 = arith.constant 0.000000e+00 : f32
      %132 = vector.broadcast %cst_85 : f32 to vector<16x1xf32>
      %133 = arith.subf %132, %131 : vector<16x1xf32>
      %134 = math.exp %133 : vector<16x1xf32>
      %135 = math.log1p %134 : vector<16x1xf32>
      %136 = arith.addf %130, %135 : vector<16x1xf32>
      %c16_i32 = arith.constant 16 : i32
      %137 = arith.muli %1, %c16_i32 : i32
      %138 = tpu.iota {dimensions = array<i32: 0>} : vector<16x1xi32>
      %139 = vector.broadcast %137 : i32 to vector<16x1xi32>
      %140 = arith.addi %139, %138 : vector<16x1xi32>
      %c16_i32_86 = arith.constant 16 : i32
      %141 = vector.broadcast %c16_i32_86 : i32 to vector<16x1xi32>
      %142 = arith.cmpi slt, %140, %141 : vector<16x1xi32>
      %143 = arith.extui %142 : vector<16x1xi1> to vector<16x1xi32>
      %144 = arith.sitofp %143 : vector<16x1xi32> to vector<16x1xf32>
      %145 = arith.mulf %136, %144 : vector<16x1xf32>
      %146 = vector.shape_cast %145 : vector<16x1xf32> to vector<1x16x1xf32>
      %cst_87 = arith.constant dense<0.000000e+00> : vector<1xf32>
      %147 = vector.multi_reduction <add>, %146, %cst_87 [1, 2] : vector<1x16x1xf32> to vector<1xf32>
      %148 = vector.shape_cast %147 : vector<1xf32> to vector<1x1x1xf32>
      %149 = vector.extract %148[0, 0, 0] : f32 from vector<1x1x1xf32>
      %150 = vector.broadcast %149 : f32 to vector<1x1xf32>
      %c0_88 = arith.constant 0 : index
      %c0_89 = arith.constant 0 : index
      %c0_90 = arith.constant 0 : index
      %151 = vector.load %arg10[%c0_88, %c0_89, %c0_90] : memref<1x8x128xf32, #tpu.memory_space<vmem>>, vector<1x8x128xf32>
      %152 = vector.shape_cast %150 : vector<1x1xf32> to vector<1x1x1xf32>
      %153 = vector.shape_cast %152 : vector<1x1x1xf32> to vector<1x1x1xf32>
      %154 = vector.broadcast %153 : vector<1x1x1xf32> to vector<1x8x128xf32>
      %155 = arith.addf %151, %154 : vector<1x8x128xf32>
      %c0_91 = arith.constant 0 : index
      %c0_92 = arith.constant 0 : index
      %c0_93 = arith.constant 0 : index
      %156 = vector.load %arg10[%c0_91, %c0_92, %c0_93] : memref<1x8x128xf32, #tpu.memory_space<vmem>>, vector<1x8x128xf32>
      tpu.vector_store %arg10[%c0_91, %c0_92, %c0_93], %155 {strides = array<i32>} : memref<1x8x128xf32, #tpu.memory_space<vmem>>, vector<1x8x128xf32>,
    } else {
    }
    return
  }
  func.func @transform_0(%arg0: i32, %arg1: i32, %arg2: i32, %arg3: memref<32xi32, #tpu.memory_space<smem>>) -> (i32, i32) {
    %c1_i32 = arith.constant 1 : i32
    %0 = arith.muli %arg0, %c1_i32 : i32
    %1 = arith.addi %0, %arg1 : i32
    %c0_i32 = arith.constant 0 : i32
    %c0_i32_0 = arith.constant 0 : i32
    return %1, %c0_i32 : i32, i32
  }
  func.func @transform_1(%arg0: i32, %arg1: i32, %arg2: i32, %arg3: memref<32xi32, #tpu.memory_space<smem>>) -> (i32, i32) {
    %c0_i32 = arith.constant 0 : i32
    %c0_i32_0 = arith.constant 0 : i32
    %c0_i32_1 = arith.constant 0 : i32
    return %c0_i32, %c0_i32_0 : i32, i32
  }
  func.func @transform_2(%arg0: i32, %arg1: i32, %arg2: i32, %arg3: memref<32xi32, #tpu.memory_space<smem>>) -> (i32, i32) {
    %c0_i32 = arith.constant 0 : i32
    %c0_i32_0 = arith.constant 0 : i32
    return %c0_i32, %arg2 : i32, i32
  }
  func.func @transform_3(%arg0: i32, %arg1: i32, %arg2: i32, %arg3: memref<32xi32, #tpu.memory_space<smem>>) -> (i32, i32) {
    %c0_i32 = arith.constant 0 : i32
    %c0_i32_0 = arith.constant 0 : i32
    return %c0_i32, %arg2 : i32, i32
  }
  func.func @transform_4(%arg0: i32, %arg1: i32, %arg2: i32, %arg3: memref<32xi32, #tpu.memory_space<smem>>) -> (i32, i32) {
    %c0_i32 = arith.constant 0 : i32
    %c0_i32_0 = arith.constant 0 : i32
    return %c0_i32, %arg2 : i32, i32
  }
  func.func @transform_5(%arg0: i32, %arg1: i32, %arg2: i32, %arg3: memref<32xi32, #tpu.memory_space<smem>>) -> (i32, i32) {
    %c0_i32 = arith.constant 0 : i32
    %c0_i32_0 = arith.constant 0 : i32
    return %c0_i32, %arg2 : i32, i32
  }
  func.func @transform_6(%arg0: i32, %arg1: i32, %arg2: i32, %arg3: memref<32xi32, #tpu.memory_space<smem>>) -> (i32, i32, i32) {
    %c0_i32 = arith.constant 0 : i32
    %c0_i32_0 = arith.constant 0 : i32
    %c0_i32_1 = arith.constant 0 : i32
    return %arg0, %c0_i32, %c0_i32_0 : i32, i32, i32
  }
}

</mosaic_0001>

<bundles_post_ra>
// kernel: tpu_custom_call.1
= control target key start
LH: loop header
LB: loop body
LE: loop exit
PB: predicated region body
PF: predicated region fallthrough
CT: control target
= control target key end

     0   :  { %s1252_s0 = inlined_call_operand.vmem [shape: s32[32], index: 0, kind: input, shape index: {}]   ;;  %s1253_s1 = inlined_call_operand.vmem [shape: s32[32,1], index: 1, kind: input, shape index: {}]   ;;  %s1254_s2 = inlined_call_operand.vmem [shape: f32[128,64], index: 2, kind: input, shape index: {}]   ;;  %s1255_s3 = inlined_call_operand.vmem [shape: f32[32,128], index: 3, kind: input, shape index: {}]   ;;  %s1256_s4 = inlined_call_operand.vmem [shape: f32[1,128], index: 4, kind: input, shape index: {}]   ;;  %s1257_s5 = inlined_call_operand.vmem [shape: f32[32,128], index: 5, kind: input, shape index: {}]   ;;  %s1258_s6 = inlined_call_operand.vmem [shape: f32[1,128], index: 6, kind: input, shape index: {}]   ;;  %s1259_s7 = inlined_call_operand.hbm [shape: f32[1,8,128], index: 7, kind: output, shape index: {}]  }
   0x1   :  { %s12_s26 = sshll.u32 %s1252_s0, 4  ;;  %s13_s26 = int_to_ptr.vmem [resolvable:$true] %s12_s26 }
   0x2   :  { %s898_s27 = scalar_lea.vmem %s13_s26, 16  ;;  %p903_p1 = scmp.lt.s32.totalorder %s13_s26, %s13_s26 }
   0x3   :  { %p899_p0 = scmp.ne.s32.totalorder %s13_s26, %s898_s27  ;;  %p904_p2 = scmp.lt.s32.totalorder %s898_s27, %s898_s27 }
   0x5   :  { %p905_p3 = por %p904_p2, %p903_p1 }
   0x7   :  { %p906_p4 = pnand %p905_p3, %p899_p0 }
   0x9   :  { %909 = shalt.err (!%p906_p4)  }
   0xa   :  { %s944_s28 = smov [#allocation7]  }
   0xb   :  { %15 = dma.vmem_to_smem %s13_s26, 16, %s944_s28, [#allocation6] }
   0xc   :  { %936 = dma.done.wait [#allocation6], 16 }
   0xd   :  { %937 = vsyncadd [#allocation6], 4294967280 }
   0xe   :  { %17 = sfence }
   0xf   :  { %18 = vsyncpa [#allocation9], 0  ;;  %s940_s29 = smov 0  }
  0x10 LB: > { %s66_s30 = sld [smem:[#allocation7 + %s942_s29]]  ;;  %vm70_vm0 = vcmask 516096   ;;  %s69_s10 = scalar_lea.vmem [#allocation2], %s942_s29  ;;  %s942_s29 = sphi %s940_s29, %s64_s29  }
  0x11   : > { %s64_s29 = sadd.s32 1, %s942_s29  }
  0x12   : > { %p61_p5 = scmp.ge.s32.totalorder %s64_s29, 32  }
  0x13   :  { %v132_v2 = vld [vmem:[%s1255_s3] sm:$0xff] (%p61_p5)  ;;  %v133_v3 = vld [vmem:[%s1255_s3 + $0x8] sm:$0xff] (%p61_p5)  ;;  %vm143_vm1 = vcmask (%p61_p5), 261120   ;;  %s945_s15 = smov (%p61_p5), 96   ;;  %v134_v7 = vld [vmem:[%s1255_s3 + $0x10] sm:$0xff] (%p61_p5)  ;;  %vm72_vm2 = vcmask (%p61_p5), 7168  }
  0x14   :  { %63 = sbr.rel (!%p61_p5) target bundleno = 16 (0x10), region = 71  ;;  %v808_v4 = vpack.c.bf16 (%p61_p5), %v133_v3, %v132_v2  ;;  %v135_v8 = vld [vmem:[%s1255_s3 + $0x18] sm:$0xff] (%p61_p5)  ;;  %v358_v10 = vld [vmem:[%s1257_s5] sm:$0xff] (%p61_p5)  ;;  %v359_v12 = vld [vmem:[%s1257_s5 + $0x8] sm:$0xff] (%p61_p5)  ;;  %v946_v30 = vmov (%p61_p5), -1e+30  }
  0x15   :  { %v812_v11 = vpack.c.bf16 (%p61_p5), %v135_v8, %v134_v7  ;;  %v360_v13 = vld [vmem:[%s1257_s5 + $0x10] sm:$0xff] (%p61_p5)  ;;  %v361_v14 = vld [vmem:[%s1257_s5 + $0x18] sm:$0xff] (%p61_p5)  ;;  %v816_v15 = vpack.c.bf16 (%p61_p5), %v359_v12, %v358_v10  ;;  %v754_v21 = vld [vmem:[%s1256_s4] ss:$0 sm:$0xff] (%p61_p5)  ;;  %74 = vst.msk [vmem:[#allocation3 + $0x8] sm:$0xff] (%p61_p5), %vm72_vm2, %v946_v30  ;;  %v947_v31 = vmov (%p61_p5), 0  }
  0x16   : > { %s67_s9 = scalar_lea.vmem %s1254_s2, %s66_s30  ;;  %809 = vmatprep.subr.bf16.mxu0 (%p61_p5), %v808_v4  ;;  %v820_v16 = vpack.c.bf16 (%p61_p5), %v361_v14, %v360_v13  ;;  %73 = vst.msk [vmem:[#allocation3] sm:$0xff] (%p61_p5), %vm72_vm2, %v946_v30  ;;  %75 = vst.msk [vmem:[#allocation3 + $0x10] sm:$0xff] (%p61_p5), %vm72_vm2, %v946_v30  ;;  %840 = vset.pattern.permute.xlu0 (%p61_p5), %v947_v31  ;;  %v759_v32 = vld [vmem:[%s1258_s6] ss:$0 sm:$0xff] (%p61_p5)  ;;  %v948_v41 = vmov (%p61_p5), 0.0   ;;  %v105_v51 = vld [vmem:[%s1253_s1 + $0x10] sm:$0xff] (%p61_p5) }
  0x17   : > { %v68_v0 = vld [vmem:[%s67_s9] sm:$0x1]  ;;  %811 = vmatpush3.bf16.msra.mxu0 (%p61_p5), %v808_v4  ;;  %817 = vmatprep.subr.bf16.mxu1 (%p61_p5), %v816_v15  ;;  %76 = vst.msk [vmem:[#allocation3 + $0x18] sm:$0xff] (%p61_p5), %vm72_vm2, %v946_v30  ;;  %77 = vst.msk [vmem:[#allocation3 + $0x20] sm:$0xff] (%p61_p5), %vm72_vm2, %v946_v30  ;;  %v104_v12 = vld [vmem:[%s1253_s1 + $0x8] sm:$0xff] (%p61_p5) }
  0x18   : > { %71 = vst.msk [vmem:[%s69_s10] sm:$0x1] %vm70_vm0, %v68_v0  ;;  %813 = vmatprep.subr.bf16.mxu0 (%p61_p5), %v812_v11  ;;  %819 = vmatpush3.bf16.msra.mxu1 (%p61_p5), %v816_v15  ;;  %v106_v15 = vld [vmem:[%s1253_s1 + $0x18] sm:$0xff] (%p61_p5) }
  0x19   :  { %821 = vmatprep.subr.bf16.mxu1 (%p61_p5), %v820_v16  ;;  %78 = vst.msk [vmem:[#allocation3 + $0x28] sm:$0xff] (%p61_p5), %vm72_vm2, %v946_v30  ;;  %79 = vst.msk [vmem:[#allocation3 + $0x30] sm:$0xff] (%p61_p5), %vm72_vm2, %v946_v30  ;;  %841 = vset.pattern.permute.xlu1 (%p61_p5), %v947_v31 }
  0x1a   :  { %80 = vst.msk [vmem:[#allocation3 + $0x38] sm:$0xff] (%p61_p5), %vm72_vm2, %v946_v30  ;;  %81 = vst.msk [vmem:[#allocation4] sm:$0xff] (%p61_p5), %vm72_vm2, %v948_v41 }
  0x1b   :  { %815 = vmatpush3.bf16.msra.mxu0 %v812_v11  ;;  %82 = vst.msk [vmem:[#allocation4 + $0x8] sm:$0xff] %vm72_vm2, %v948_v41  ;;  %83 = vst.msk [vmem:[#allocation4 + $0x10] sm:$0xff] %vm72_vm2, %v948_v41  ;;  %v103_v11 = vld [vmem:[%s1253_s1] sm:$0xff]  ;;  %s949_s1 = smov [#allocation8]  }
  0x1c   :  { %823 = vmatpush3.bf16.msra.mxu1 %v820_v16  ;;  %84 = vst.msk [vmem:[#allocation4 + $0x18] sm:$0xff] %vm72_vm2, %v948_v41  ;;  %85 = vst.msk [vmem:[#allocation4 + $0x20] sm:$0xff] %vm72_vm2, %v948_v41  ;;  %v1082_v42 = vld [vmem:[#allocation3 + $0x8] sm:$0xff]  ;;  %s733_s11 = sshll.u32 %s949_s1, 4  ;;  %s734_s11 = int_to_ptr.vmem [resolvable:$true] %s733_s11 }
  0x1d   :  { %86 = vst.msk [vmem:[#allocation4 + $0x28] sm:$0xff] %vm72_vm2, %v948_v41  ;;  %87 = vst.msk [vmem:[#allocation4 + $0x30] sm:$0xff] %vm72_vm2, %v948_v41  ;;  %v1084_v43 = vld [vmem:[#allocation3] sm:$0xff]  ;;  %v1110_v54 = vld [vmem:[#allocation3 + $0x10] sm:$0xff]  ;;  %s910_s13 = scalar_lea.vmem %s734_s11, 128  ;;  %p915_p7 = scmp.lt.s32.totalorder %s734_s11, %s734_s11 }
  0x1e   :  { %88 = vst.msk [vmem:[#allocation4 + $0x38] sm:$0xff] %vm72_vm2, %v948_v41  ;;  %89 = vst.msk [vmem:[#allocation5] sm:$0xff] %vm72_vm2, %v948_v41  ;;  %v1097_v49 = vld [vmem:[#allocation3 + $0x18] sm:$0xff]  ;;  %v1127_v60 = vld [vmem:[#allocation3 + $0x20] sm:$0xff]  ;;  %p911_p6 = scmp.ne.s32.totalorder %s734_s11, %s910_s13  ;;  %p916_p8 = scmp.lt.s32.totalorder %s910_s13, %s910_s13 }
  0x1f   :  { %v354_v1 = vld [vmem:[#allocation2] sm:$0xff]  ;;  %v355_v5 = vld [vmem:[#allocation2 + $0x8] sm:$0xff]  ;;  %v356_v6 = vld [vmem:[#allocation2 + $0x10] sm:$0xff]  ;;  %90 = vst.msk [vmem:[#allocation5 + $0x8] sm:$0xff] %vm72_vm2, %v948_v41 }
  0x20   :  { %373 = vrot.lane.b32.xlu0 %v354_v1, %s945_s15  ;;  %788 = vmatprep.mubr.msk.f32.mxu0 %vm143_vm1, %v354_v1  ;;  %v357_v9 = vld [vmem:[#allocation2 + $0x18] sm:$0xff]  ;;  %91 = vst.msk [vmem:[#allocation5 + $0x10] sm:$0xff] %vm72_vm2, %v948_v41  ;;  %92 = vst.msk [vmem:[#allocation5 + $0x18] sm:$0xff] %vm72_vm2, %v948_v41  ;;  %v1125_v59 = vld [vmem:[#allocation3 + $0x28] sm:$0xff]  ;;  %p917_p9 = por %p916_p8, %p915_p7 }
  0x21   :  { %377 = vrot.lane.b32.xlu1 %v356_v6, %s945_s15  ;;  %789 = vmatmul.mubr.msk.f32.vlgmr.msra.gmra.mrb[0].mxu0 %vm143_vm1, %v355_v5  ;;  %93 = vst.msk [vmem:[#allocation5 + $0x20] sm:$0xff] %vm72_vm2, %v948_v41  ;;  %94 = vst.msk [vmem:[#allocation5 + $0x28] sm:$0xff] %vm72_vm2, %v948_v41  ;;  %v1135_v1 = vld [vmem:[#allocation3 + $0x38] sm:$0xff]  ;;  %v1142_v3 = vld [vmem:[#allocation3 + $0x30] sm:$0xff] }
  0x22   :  { %791 = vmatprep.mubr.msk.f32.mxu0 %vm143_vm1, %v356_v6  ;;  %95 = vst.msk [vmem:[#allocation5 + $0x30] sm:$0xff] %vm72_vm2, %v948_v41  ;;  %96 = vst.msk [vmem:[#allocation5 + $0x38] sm:$0xff] %vm72_vm2, %v948_v41  ;;  %p918_p10 = pnand %p917_p9, %p911_p6 }
  0x24   :  { %375 = vrot.lane.b32.xlu0 %v355_v5, %s945_s15 }
  0x25   :  { %379 = vrot.lane.b32.xlu1 %v357_v9, %s945_s15  ;;  %792 = vmatmul.mubr.msk.f32.gmra.mrb[2].mxu0 %vm143_vm1, %v357_v9 }
  0x92   :  { %v374_v17 = vpop.permute.xlu0 %373 }
  0x93   :  { %802 = vmatprep.mubr.msk.f32.mxu1 %vm143_vm1, %v374_v17  ;;  %v378_v18 = vpop.permute.xlu1 %377 }
  0x96   :  { %v376_v19 = vpop.permute.xlu0 %375 }
  0x97   :  { %803 = vmatmul.mubr.msk.f32.vlgmr.msra.gmra.mrb[0].mxu1 %vm143_vm1, %v376_v19  ;;  %v380_v20 = vpop.permute.xlu1 %379 }
  0x98   :  { %805 = vmatprep.mubr.msk.f32.mxu1 %vm143_vm1, %v378_v18 }
  0x9b   :  { %806 = vmatmul.mubr.msk.f32.gmra.mrb[2].mxu1 %vm143_vm1, %v380_v20 }
  0xf4   :  { %v790_v22 = vpop.f32.mrb[0].mxu0 }
  0xf5   :  { %v1031_v23 = vadd.f32 %v790_v22, %v754_v21  ;;  %v222_v24 = vpop.f32.mrb[1].mxu0 }
  0xf6   :  { %v1033_v25 = vadd.f32 %v754_v21, %v222_v24 }
  0xf7   :  { %251 = vmax.xlane.f32.xlu1 %v1031_v23 }
  0xf8   :  { %249 = vmax.xlane.f32.xlu0 %v1033_v25  ;;  %v793_v26 = vpop.f32.mrb[2].mxu0 }
  0xf9   :  { %v1037_v27 = vadd.f32 %v793_v26, %v754_v21  ;;  %v232_v28 = vpop.f32.mrb[3].mxu0 }
  0xfa   :  { %v1040_v29 = vadd.f32 %v754_v21, %v232_v28 }
  0xfc   :  { %255 = vmax.xlane.f32.xlu0 %v1037_v27 }
 0x100   :  { %253 = vmax.xlane.f32.xlu0 %v1040_v29 }
 0x16a   :  { %v804_v33 = vpop.f32.mrb[0].mxu1 }
 0x16b   :  { %v1054_v34 = vadd.f32 %v804_v33, %v759_v32  ;;  %v455_v35 = vpop.f32.mrb[1].mxu1 }
 0x16c   :  { %v1056_v36 = vadd.f32 %v759_v32, %v455_v35 }
 0x16d   :  { %486 = vmax.xlane.f32.xlu0 %v1054_v34 }
 0x16e   :  { %484 = vmax.xlane.f32.xlu1 %v1056_v36  ;;  %v807_v37 = vpop.f32.mrb[2].mxu1 }
 0x16f   :  { %v1060_v38 = vadd.f32 %v807_v37, %v759_v32  ;;  %v465_v39 = vpop.f32.mrb[3].mxu1 }
 0x170   :  { %v1062_v40 = vadd.f32 %v759_v32, %v465_v39 }
 0x171   :  { %490 = vmax.xlane.f32.xlu0 %v1060_v38 }
 0x172   :  { %488 = vmax.xlane.f32.xlu1 %v1062_v40 }
 0x184   :  { %v252_v44 = vpop.xlane.xlu1 %251 }
 0x185   :  { %v1087_v45 = vmax.f32 %v1082_v42, %v252_v44  ;;  %v250_v46 = vpop.xlane.xlu0 %249 }
 0x186   :  { %v1090_v47 = vmax.f32 %v1084_v43, %v250_v46 }
 0x187   :  { %v262_v48 = vsub.f32 %v1082_v42, %v1087_v45  ;;  %335 = vst.msk [vmem:[#allocation3 + $0x8] sm:$0xff] %vm72_vm2, %v1087_v45  ;;  %284 = vperm.xlu0 %840, %v1087_v45  }
 0x188   :  { %v261_v50 = vsub.f32 %v1084_v43, %v1090_v47  ;;  %334 = vst.msk [vmem:[#allocation3] sm:$0xff] %vm72_vm2, %v1090_v47  ;;  %279 = vperm.xlu1 %841, %v1090_v47  }
 0x189   :  { %v256_v52 = vpop.xlane.xlu0 %255 }
 0x18a   :  { %v1108_v53 = vmax.f32 %v1097_v49, %v256_v52 }
 0x18b   :  { %119 = vperm.xlu0 %840, %v105_v51  }
 0x18c   :  { %v264_v55 = vsub.f32 %v1097_v49, %v1108_v53  ;;  %337 = vst.msk [vmem:[#allocation3 + $0x18] sm:$0xff] %vm72_vm2, %v1108_v53  ;;  %294 = vperm.xlu1 %841, %v1108_v53   ;;  %v245_v49 = vld [vmem:[#allocation4] sm:$0xff] }
 0x18d   :  { %v254_v56 = vpop.xlane.xlu0 %253 }
 0x18e   :  { %v1118_v57 = vmax.f32 %v1110_v54, %v254_v56 }
 0x190   :  { %v263_v58 = vsub.f32 %v1110_v54, %v1118_v57  ;;  %336 = vst.msk [vmem:[#allocation3 + $0x10] sm:$0xff] %vm72_vm2, %v1118_v57  ;;  %289 = vperm.xlu1 %841, %v1118_v57   ;;  %v248_v54 = vld [vmem:[#allocation4 + $0x18] sm:$0xff] }
 0x1fa   :  { %v487_v61 = vpop.xlane.xlu0 %486 }
 0x1fb   :  { %v1130_v62 = vmax.f32 %v1125_v59, %v487_v61  ;;  %v485_v63 = vpop.xlane.xlu1 %484 }
 0x1fc   :  { %v1133_v0 = vmax.f32 %v1127_v60, %v485_v63 }
 0x1fd   :  { %v497_v2 = vsub.f32 %v1125_v59, %v1130_v62  ;;  %569 = vst.msk [vmem:[#allocation3 + $0x28] sm:$0xff] %vm72_vm2, %v1130_v62  ;;  %519 = vperm.xlu1 %841, %v1130_v62  }
 0x1fe   :  { %v496_v4 = vsub.f32 %v1127_v60, %v1133_v0  ;;  %568 = vst.msk [vmem:[#allocation3 + $0x20] sm:$0xff] %vm72_vm2, %v1133_v0  ;;  %v491_v5 = vpop.xlane.xlu0 %490 }
 0x1ff   :  { %v489_v6 = vpop.xlane.xlu1 %488  ;;  %v1149_v7 = vmax.f32 %v1135_v1, %v491_v5  ;;  %v502_v42 = vmul.f32 1.442695, %v497_v2 }
 0x200   :  { %v1152_v8 = vmax.f32 %v1142_v3, %v489_v6  ;;  %v500_v45 = vmul.f32 1.442695, %v496_v4 }
 0x201   :  { %v499_v9 = vsub.f32 %v1135_v1, %v1149_v7  ;;  %571 = vst.msk [vmem:[#allocation3 + $0x38] sm:$0xff] %vm72_vm2, %v1149_v7  ;;  %514 = vperm.xlu1 %841, %v1133_v0  }
 0x202   :  { %v498_v10 = vsub.f32 %v1142_v3, %v1152_v8  ;;  %570 = vst.msk [vmem:[#allocation3 + $0x30] sm:$0xff] %vm72_vm2, %v1152_v8  ;;  %v482_v3 = vld [vmem:[#allocation4 + $0x30] sm:$0xff] }
 0x205   :  { %524 = vperm.xlu1 %841, %v1152_v8  }
 0x206   :  { %v285_v28 = vpop.permute.xlu0 %284 }
 0x207   :  { %v280_v13 = vpop.permute.xlu1 %279  ;;  %v298_v30 = vsub.f32 %v1031_v23, %v285_v28 }
 0x208   :  { %v297_v14 = vsub.f32 %v1033_v25, %v280_v13 }
 0x209   :  { %529 = vperm.xlu1 %841, %v1149_v7   ;;  %v303_v32 = vmul.f32 1.442695, %v298_v30 }
 0x20a   :  { %v301_v16 = vmul.f32 1.442695, %v297_v14 }
 0x20b   :  { %v295_v17 = vpop.permute.xlu1 %294 }
 0x20c   :  { %842 = vpow2.f32 %v301_v16  ;;  %v300_v18 = vsub.f32 %v1037_v27, %v295_v17  ;;  %v120_v17 = vpop.permute.xlu0 %119 }
 0x20d   :  { %113 = vperm.xlu1 %841, %v103_v11  }
 0x20e   :  { %v307_v19 = vmul.f32 1.442695, %v300_v18 }
 0x20f   :  { %v290_v20 = vpop.permute.xlu1 %289 }
 0x210   :  { %844 = vpow2.f32 %v307_v19  ;;  %v299_v21 = vsub.f32 %v1040_v29, %v290_v20 }
 0x211   :  { %116 = vperm.xlu1 %841, %v104_v12   ;;  %v108_v12 = vlaneseq }
 0x212   :  { %v305_v22 = vmul.f32 1.442695, %v299_v21  ;;  %v265_v21 = vmul.f32 1.442695, %v261_v50 }
 0x213   :  { %v109_v14 = vand.u32 127, %v108_v12 }
 0x214   :  { %846 = vpow2.f32 %v305_v22 }
 0x215   :  { %122 = vperm.xlu1 %841, %v106_v15   ;;  %848 = vpow2.f32 %v303_v32  ;;  %vm126_vm4 = vcmp.eq.s32.totalorder %v109_v14, %v120_v17  ;;  %v343_v17 = vld [vmem:[#allocation5 + $0x8] sm:$0xff] }
 0x216   :  { %v843_v24 = vpop.eup %842  ;;  %v323_v22 = vsel %vm126_vm4, %v1040_v29, 0.0  ;;  %v558_v29 = vsel %vm126_vm4, %v1062_v40, 0.0 }
 0x217   :  { %309 = vadd.xlane.f32.xlu0 %v843_v24 }
 0x21a   :  { %v845_v26 = vpop.eup %844 }
 0x21b   :  { %315 = vadd.xlane.f32.xlu0 %v845_v26 }
 0x21e   :  { %v847_v31 = vpop.eup %846 }
 0x21f   :  { %313 = vadd.xlane.f32.xlu0 %v847_v31  ;;  %v849_v33 = vpop.eup %848  ;;  %v267_v31 = vmul.f32 1.442695, %v262_v48  ;;  %v504_v48 = vmul.f32 1.442695, %v498_v10 }
 0x239   :  { %311 = vadd.xlane.f32.xlu1 %v849_v33 }
 0x27c   :  { %v520_v35 = vpop.permute.xlu1 %519 }
 0x27d   :  { %v533_v37 = vsub.f32 %v1054_v34, %v520_v35 }
 0x27f   :  { %v538_v39 = vmul.f32 1.442695, %v533_v37  ;;  %v246_v37 = vld [vmem:[#allocation4 + $0x8] sm:$0xff] }
 0x280   :  { %v515_v41 = vpop.permute.xlu1 %514 }
 0x281   :  { %850 = vpow2.f32 %v538_v39  ;;  %v532_v44 = vsub.f32 %v1056_v36, %v515_v41 }
 0x283   :  { %v536_v46 = vmul.f32 1.442695, %v532_v44 }
 0x284   :  { %v525_v51 = vpop.permute.xlu1 %524 }
 0x285   :  { %852 = vpow2.f32 %v536_v46  ;;  %v534_v52 = vsub.f32 %v1062_v40, %v525_v51  ;;  %v506_v46 = vmul.f32 1.442695, %v499_v9  ;;  %v483_v9 = vld [vmem:[#allocation4 + $0x38] sm:$0xff] }
 0x287   :  { %v540_v56 = vmul.f32 1.442695, %v534_v52  ;;  %v481_v52 = vld [vmem:[#allocation4 + $0x28] sm:$0xff] }
 0x288   :  { %v530_v61 = vpop.permute.xlu1 %529 }
 0x289   :  { %854 = vpow2.f32 %v540_v56  ;;  %v535_v63 = vsub.f32 %v1060_v38, %v530_v61  ;;  %v480_v56 = vld [vmem:[#allocation4 + $0x20] sm:$0xff] }
 0x28b   :  { %v851_v5 = vpop.eup %850  ;;  %v542_v6 = vmul.f32 1.442695, %v535_v63 }
 0x28c   :  { %546 = vadd.xlane.f32.xlu0 %v851_v5  ;;  %v114_v11 = vpop.permute.xlu1 %113 }
 0x28d   :  { %856 = vpow2.f32 %v542_v6  ;;  %vm124_vm3 = vcmp.eq.s32.totalorder %v109_v14, %v114_v11  ;;  %v342_v6 = vld [vmem:[#allocation5] sm:$0xff] }
 0x28e   :  { %v321_v19 = vsel %vm124_vm3, %v1033_v25, 0.0  ;;  %858 = vpow2.f32 %v265_v21  ;;  %v271_v25 = vmul.f32 1.442695, %v264_v55  ;;  %v556_v26 = vsel %vm124_vm3, %v1056_v36, 0.0 }
 0x28f   :  { %v853_v13 = vpop.eup %852 }
 0x290   :  { %544 = vadd.xlane.f32.xlu1 %v853_v13  ;;  %v117_v16 = vpop.permute.xlu1 %116  ;;  %860 = vpow2.f32 %v271_v25 }
 0x291   :  { %vm125_vm5 = vcmp.eq.s32.totalorder %v109_v14, %v117_v16 }
 0x292   :  { %v322_v24 = vsel %vm125_vm5, %v1031_v23, 0.0  ;;  %v269_v23 = vmul.f32 1.442695, %v263_v58  ;;  %v557_v47 = vsel %vm125_vm5, %v1054_v34, 0.0  ;;  %v247_v34 = vld [vmem:[#allocation4 + $0x10] sm:$0xff] }
 0x293   :  { %v855_v15 = vpop.eup %854 }
 0x294   :  { %548 = vadd.xlane.f32.xlu1 %v855_v15  ;;  %v123_v20 = vpop.permute.xlu1 %122  ;;  %862 = vpow2.f32 %v269_v23  ;;  %v345_v23 = vld [vmem:[#allocation5 + $0x18] sm:$0xff] }
 0x295   :  { %vm127_vm6 = vcmp.eq.s32.totalorder %v109_v14, %v123_v20  ;;  %864 = vpow2.f32 %v267_v31 }
 0x296   :  { %v324_v43 = vsel %vm127_vm6, %v1037_v27, 0.0  ;;  %v559_v36 = vsel %vm127_vm6, %v1060_v38, 0.0  ;;  %866 = vpow2.f32 %v502_v42 }
 0x297   :  { %v857_v18 = vpop.eup %856  ;;  %868 = vpow2.f32 %v500_v45  ;;  %v598_v45 = vld [vmem:[#allocation3 + $0x10] sm:$0xff] }
 0x298   :  { %550 = vadd.xlane.f32.xlu0 %v857_v18  ;;  %325 = vadd.xlane.f32.xlu1 %v321_v19  ;;  %v859_v27 = vpop.eup %858  ;;  %870 = vpow2.f32 %v504_v48  ;;  %v344_v19 = vld [vmem:[#allocation5 + $0x10] sm:$0xff]  ;;  %v628_v48 = vld [vmem:[#allocation3 + $0x20] sm:$0xff] }
 0x299   :  { %v273_v50 = vmul.f32 %v859_v27, %v245_v49  ;;  %872 = vpow2.f32 %v506_v46 }
 0x29a   :  { %v861_v53 = vpop.eup %860 }
 0x29b   :  { %v276_v40 = vmul.f32 %v861_v53, %v248_v54  ;;  %v579_v54 = vld [vmem:[#allocation5 + $0x30] sm:$0xff] }
 0x29c   :  { %329 = vadd.xlane.f32.xlu1 %v323_v22  ;;  %327 = vadd.xlane.f32.xlu0 %v322_v24 }
 0x29e   :  { %v863_v58 = vpop.eup %862 }
 0x29f   :  { %v275_v38 = vmul.f32 %v863_v58, %v247_v34  ;;  %v865_v35 = vpop.eup %864 }
 0x2a0   :  { %560 = vadd.xlane.f32.xlu1 %v556_v26  ;;  %331 = vadd.xlane.f32.xlu0 %v324_v43  ;;  %v274_v39 = vmul.f32 %v865_v35, %v246_v37  ;;  %v867_v51 = vpop.eup %866 }
 0x2a1   :  { %v509_v59 = vmul.f32 %v867_v51, %v481_v52  ;;  %v869_v62 = vpop.eup %868 }
 0x2a2   :  { %v508_v60 = vmul.f32 %v869_v62, %v480_v56  ;;  %v871_v0 = vpop.eup %870 }
 0x2a3   :  { %v510_v10 = vmul.f32 %v871_v0, %v482_v3  ;;  %v873_v1 = vpop.eup %872 }
 0x2a4   :  { %564 = vadd.xlane.f32.xlu1 %v558_v29  ;;  %562 = vadd.xlane.f32.xlu0 %v557_v47  ;;  %v310_v55 = vpop.xlane.xlu0 %309  ;;  %v511_v12 = vmul.f32 %v873_v1, %v483_v9  ;;  %v577_v29 = vld [vmem:[#allocation5 + $0x20] sm:$0xff] }
 0x2a5   :  { %v317_v57 = vadd.f32 %v310_v55, %v273_v50  ;;  %v578_v55 = vld [vmem:[#allocation5 + $0x28] sm:$0xff] }
 0x2a7   :  { %338 = vst.msk [vmem:[#allocation4] sm:$0xff] %vm72_vm2, %v317_v57 }
 0x2a8   :  { %566 = vadd.xlane.f32.xlu0 %v559_v36  ;;  %v316_v28 = vpop.xlane.xlu0 %315 }
 0x2a9   :  { %v320_v30 = vadd.f32 %v316_v28, %v276_v40 }
 0x2ab   :  { %341 = vst.msk [vmem:[#allocation4 + $0x18] sm:$0xff] %vm72_vm2, %v320_v30 }
 0x2ac   :  { %v314_v32 = vpop.xlane.xlu0 %313 }
 0x2ad   :  { %v319_v33 = vadd.f32 %v314_v32, %v275_v38 }
 0x2ae   :  { %v600_v11 = vld [vmem:[#allocation4] sm:$0xff] }
 0x2af   :  { %340 = vst.msk [vmem:[#allocation4 + $0x10] sm:$0xff] %vm72_vm2, %v319_v33  ;;  %v580_v33 = vld [vmem:[#allocation5 + $0x38] sm:$0xff] }
 0x2b2   :  { %v603_v18 = vld [vmem:[#allocation4 + $0x18] sm:$0xff] }
 0x2b6   :  { %v602_v5 = vld [vmem:[#allocation4 + $0x10] sm:$0xff] }
 0x2b7   :  { %874 = vlog2.f32 %v602_v5 }
 0x2b8   :  { %876 = vlog2.f32 %v600_v11 }
 0x2c1   :  { %v875_v53 = vpop.eup %874 }
 0x2c2   :  { %v877_v40 = vpop.eup %876  ;;  %v609_v38 = vmul.f32 0.6931472, %v875_v53 }
 0x2c3   :  { %v605_v35 = vmul.f32 0.6931472, %v877_v40 }
 0x2c6   :  { %v312_v41 = vpop.xlane.xlu1 %311 }
 0x2c7   :  { %v318_v44 = vadd.f32 %v312_v41, %v274_v39 }
 0x2c9   :  { %339 = vst.msk [vmem:[#allocation4 + $0x8] sm:$0xff] %vm72_vm2, %v318_v44 }
 0x2d0   :  { %v601_v20 = vld [vmem:[#allocation4 + $0x8] sm:$0xff] }
 0x319   :  { %v547_v2 = vpop.xlane.xlu0 %546 }
 0x31a   :  { %v553_v61 = vadd.f32 %v547_v2, %v509_v59  ;;  %v596_v59 = vld [vmem:[#allocation3] sm:$0xff]  ;;  %v614_v2 = vadd.f32 %v609_v38, %v598_v45 }
 0x31c   :  { %573 = vst.msk [vmem:[#allocation4 + $0x28] sm:$0xff] %vm72_vm2, %v553_v61 }
 0x31d   :  { %v545_v4 = vpop.xlane.xlu1 %544 }
 0x31e   :  { %v552_v8 = vadd.f32 %v545_v4, %v508_v60  ;;  %v612_v60 = vadd.f32 %v605_v35, %v596_v59 }
 0x320   :  { %572 = vst.msk [vmem:[#allocation4 + $0x20] sm:$0xff] %vm72_vm2, %v552_v8  ;;  %v630_v8 = vld [vmem:[#allocation3 + $0x30] sm:$0xff] }
 0x321   :  { %v549_v7 = vpop.xlane.xlu1 %548 }
 0x322   :  { %v554_v63 = vadd.f32 %v549_v7, %v510_v10  ;;  %v599_v7 = vld [vmem:[#allocation3 + $0x18] sm:$0xff] }
 0x323   :  { %v633_v22 = vld [vmem:[#allocation4 + $0x28] sm:$0xff] }
 0x324   :  { %574 = vst.msk [vmem:[#allocation4 + $0x30] sm:$0xff] %vm72_vm2, %v554_v63 }
 0x325   :  { %v551_v13 = vpop.xlane.xlu0 %550  ;;  %v326_v14 = vpop.xlane.xlu1 %325 }
 0x326   :  { %v555_v15 = vadd.f32 %v551_v13, %v511_v12  ;;  %v346_v16 = vadd.f32 %v342_v6, %v326_v14  ;;  %v597_v6 = vld [vmem:[#allocation3 + $0x8] sm:$0xff] }
 0x327   :  { %v632_v21 = vld [vmem:[#allocation4 + $0x20] sm:$0xff]  ;;  %v629_v12 = vld [vmem:[#allocation3 + $0x28] sm:$0xff] }
 0x328   :  { %575 = vst.msk [vmem:[#allocation4 + $0x38] sm:$0xff] %vm72_vm2, %v555_v15  ;;  %350 = vst.msk [vmem:[#allocation5] sm:$0xff] %vm72_vm2, %v346_v16  ;;  %878 = vlog2.f32 %v632_v21  ;;  %v631_v21 = vld [vmem:[#allocation3 + $0x38] sm:$0xff] }
 0x329   :  { %v328_v24 = vpop.xlane.xlu0 %327  ;;  %v330_v25 = vpop.xlane.xlu1 %329  ;;  %880 = vlog2.f32 %v603_v18 }
 0x32a   :  { %v347_v26 = vadd.f32 %v343_v17, %v328_v24  ;;  %v348_v43 = vadd.f32 %v344_v19, %v330_v25  ;;  %882 = vlog2.f32 %v601_v20 }
 0x32b   :  { %v634_v47 = vld [vmem:[#allocation4 + $0x30] sm:$0xff]  ;;  %884 = vlog2.f32 %v633_v22 }
 0x32c   :  { %351 = vst.msk [vmem:[#allocation5 + $0x8] sm:$0xff] %vm72_vm2, %v347_v26  ;;  %352 = vst.msk [vmem:[#allocation5 + $0x10] sm:$0xff] %vm72_vm2, %v348_v43  ;;  %886 = vlog2.f32 %v634_v47 }
 0x32d   :  { %v332_v36 = vpop.xlane.xlu0 %331  ;;  %v561_v27 = vpop.xlane.xlu1 %560 }
 0x32e   :  { %v349_v49 = vadd.f32 %v345_v23, %v332_v36  ;;  %v581_v50 = vadd.f32 %v577_v29, %v561_v27 }
 0x32f   :  { %v635_v57 = vld [vmem:[#allocation4 + $0x38] sm:$0xff]  ;;  %v592_v52 = vld [vmem:[#allocation5] sm:$0xff] }
 0x330   :  { %353 = vst.msk [vmem:[#allocation5 + $0x18] sm:$0xff] %vm72_vm2, %v349_v49  ;;  %585 = vst.msk [vmem:[#allocation5 + $0x20] sm:$0xff] %vm72_vm2, %v581_v50  ;;  %888 = vlog2.f32 %v635_v57  ;;  %v616_v9 = vsub.f32 %v592_v52, %v612_v60 }
 0x331   :  { %v563_v58 = vpop.xlane.xlu0 %562  ;;  %v565_v28 = vpop.xlane.xlu1 %564 }
 0x332   :  { %v879_v34 = vpop.eup %878  ;;  %v582_v30 = vadd.f32 %v578_v55, %v563_v58  ;;  %v583_v31 = vadd.f32 %v579_v54, %v565_v28  ;;  %v620_v25 = vmax.f32 %v616_v9, -46.0517 }
 0x333   :  { %v881_v32 = vpop.eup %880  ;;  %v637_v37 = vmul.f32 0.6931472, %v879_v34  ;;  %v594_v42 = vld [vmem:[#allocation5 + $0x10] sm:$0xff]  ;;  %v593_v14 = vld [vmem:[#allocation5 + $0x8] sm:$0xff] }
 0x334   :  { %v883_v39 = vpop.eup %882  ;;  %586 = vst.msk [vmem:[#allocation5 + $0x28] sm:$0xff] %vm72_vm2, %v582_v30  ;;  %587 = vst.msk [vmem:[#allocation5 + $0x30] sm:$0xff] %vm72_vm2, %v583_v31  ;;  %v611_v62 = vmul.f32 0.6931472, %v881_v32  ;;  %v618_v3 = vsub.f32 %v594_v42, %v614_v2 }
 0x335   :  { %v885_v41 = vpop.eup %884  ;;  %v567_v44 = vpop.xlane.xlu0 %566  ;;  %v644_v56 = vadd.f32 %v637_v37, %v628_v48  ;;  %v607_v61 = vmul.f32 0.6931472, %v883_v39 }
 0x336   :  { %v887_v46 = vpop.eup %886  ;;  %v584_v51 = vadd.f32 %v580_v33, %v567_v44  ;;  %v639_v10 = vmul.f32 0.6931472, %v885_v41  ;;  %v615_v11 = vadd.f32 %v611_v62, %v599_v7  ;;  %v622_v20 = vmax.f32 %v618_v3, -46.0517 }
 0x337   :  { %v624_v0 = vld [vmem:[#allocation5 + $0x20] sm:$0xff]  ;;  %v641_v4 = vmul.f32 0.6931472, %v887_v46  ;;  %v595_v1 = vld [vmem:[#allocation5 + $0x18] sm:$0xff]  ;;  %v613_v15 = vadd.f32 %v607_v61, %v597_v6 }
 0x338   :  { %588 = vst.msk [vmem:[#allocation5 + $0x38] sm:$0xff] %vm72_vm2, %v584_v51  ;;  %v648_v13 = vsub.f32 %v624_v0, %v644_v56  ;;  %v619_v19 = vsub.f32 %v595_v1, %v615_v11  ;;  %v645_v22 = vadd.f32 %v639_v10, %v629_v12  ;;  %v656_v50 = vsub.f32 %v620_v25, %v622_v20 }
 0x339   :  { %v646_v63 = vadd.f32 %v641_v4, %v630_v8  ;;  %v617_v43 = vsub.f32 %v593_v14, %v613_v15 }
 0x33a   :  { %v889_v5 = vpop.eup %888  ;;  %v652_v29 = vmax.f32 %v648_v13, -46.0517  ;;  %v623_v27 = vmax.f32 %v619_v19, -46.0517 }
 0x33b   :  { %v625_v16 = vld [vmem:[#allocation5 + $0x28] sm:$0xff]  ;;  %v626_v17 = vld [vmem:[#allocation5 + $0x30] sm:$0xff]  ;;  %v643_v18 = vmul.f32 0.6931472, %v889_v5  ;;  %v621_v55 = vmax.f32 %v617_v43, -46.0517 }
 0x33c   :  { %v650_v24 = vsub.f32 %v626_v17, %v646_v63  ;;  %v649_v23 = vsub.f32 %v625_v16, %v645_v22 }
 0x33d   :  { %v647_v26 = vadd.f32 %v643_v18, %v631_v21  ;;  %v657_v58 = vsub.f32 %v621_v55, %v623_v27 }
 0x33e   :  { %v654_v47 = vmax.f32 %v650_v24, -46.0517  ;;  %v653_v54 = vmax.f32 %v649_v23, -46.0517 }
 0x33f   :  { %v627_v36 = vld [vmem:[#allocation5 + $0x38] sm:$0xff] }
 0x340   :  { %v651_v49 = vsub.f32 %v627_v36, %v647_v26  ;;  %v658_v53 = vsub.f32 %v652_v29, %v654_v47 }
 0x342   :  { %v655_v57 = vmax.f32 %v651_v49, -46.0517  ;;  %v660_v40 = vsub.f32 %v656_v50, %v658_v53 }
 0x344   :  { %v659_v28 = vsub.f32 %v653_v54, %v655_v57  ;;  %v662_v34 = vmul.f32 0.1, %v660_v40 }
 0x346   :  { %v661_v30 = vsub.f32 %v657_v58, %v659_v28  ;;  %v668_v31 = vand.u32 2147483647, %v662_v34  ;;  %v664_v62 = vsub.f32 0.0, %v662_v34 }
 0x348   :  { %v663_v38 = vmul.f32 0.1, %v661_v30  ;;  %v670_v32 = vsub.f32 0.0, %v668_v31  ;;  %v666_v8 = vmax.f32 %v664_v62, 0.0 }
 0x34a   :  { %v669_v33 = vand.u32 2147483647, %v663_v38  ;;  %v672_v35 = vmul.f32 1.442695, %v670_v32  ;;  %v665_v60 = vsub.f32 0.0, %v663_v38 }
 0x34c   :  { %v671_v37 = vsub.f32 0.0, %v669_v33  ;;  %890 = vpow2.f32 %v672_v35  ;;  %v667_v7 = vmax.f32 %v665_v60, 0.0 }
 0x34e   :  { %v674_v39 = vmul.f32 1.442695, %v671_v37 }
 0x350   :  { %892 = vpow2.f32 %v674_v39 }
 0x356   :  { %v891_v41 = vpop.eup %890 }
 0x357   :  { %v676_v44 = vadd.f32 1.0, %v891_v41  ;;  %v679_v48 = vmul.f32 -0.5, %v891_v41  ;;  %v682_v52 = vand.u32 2147483647, %v891_v41 }
 0x359   :  { %894 = vlog2.f32 %v676_v44  ;;  %v680_v46 = vadd.f32 1.0, %v679_v48  ;;  %vm683_vm7 = vcmp.lt.f32.partialorder %v682_v52, 0.0004427343 }
 0x35a   :  { %v893_v42 = vpop.eup %892 }
 0x35b   :  { %v685_v45 = vadd.f32 1.0, %v893_v42  ;;  %v688_v51 = vmul.f32 -0.5, %v893_v42  ;;  %v681_v56 = vmul.f32 %v891_v41, %v680_v46  ;;  %v691_v0 = vand.u32 2147483647, %v893_v42 }
 0x35d   :  { %896 = vlog2.f32 %v685_v45  ;;  %v689_v61 = vadd.f32 1.0, %v688_v51  ;;  %vm692_vm8 = vcmp.lt.f32.partialorder %v691_v0, 0.0004427343 }
 0x35f   :  { %v690_v1 = vmul.f32 %v893_v42, %v689_v61 }
 0x363   :  { %v895_v59 = vpop.eup %894 }
 0x364   :  { %v678_v2 = vmul.f32 0.6931472, %v895_v59 }
 0x366   :  { %v684_v4 = vsel %vm683_vm7, %v681_v56, %v678_v2 }
 0x367   :  { %v897_v3 = vpop.eup %896  ;;  %v694_v9 = vadd.f32 %v684_v4, %v666_v8 }
 0x368   :  { %v687_v10 = vmul.f32 0.6931472, %v897_v3 }
 0x369   :  { %v711_v6 = vsel %vm72_vm2, %v694_v9, 0.0 }
 0x36a   :  { %v693_v63 = vsel %vm692_vm8, %v690_v1, %v687_v10 }
 0x36b   :  { %v695_v5 = vadd.f32 %v693_v63, %v667_v7 }
 0x36d   :  { %v712_v11 = vsel %vm72_vm2, %v695_v5, 0.0 }
 0x36e   :  { %v713_v12 = vadd.f32 %v712_v11, %v711_v6 }
 0x370   :  { %714 = vadd.xlane.f32.xlu1 %v713_v12 }
 0x3fd   :  { %v715_v13 = vpop.xlane.xlu1 %714 }
 0x3fe   :  { %v716_v14 = vrot.slane %v715_v13, 4 }
 0x400   :  { %v717_v15 = vadd.f32 %v716_v14, %v715_v13 }
 0x402   :  { %v718_v16 = vrot.slane %v717_v15, 2 }
 0x404   :  { %v719_v17 = vadd.f32 %v718_v16, %v717_v15 }
 0x406   :  { %v720_v18 = vrot.slane %v719_v17, 1 }
 0x408   :  { %v721_v19 = vadd.f32 %v720_v18, %v719_v17 }
 0x40a   :  { %824 = vpush %v721_v19 }
 0x43b   :  { %s825_s12 = spop %824 }
 0x43c   :  { %v724_v20 = vstv %s825_s12 }
 0x43d   :  { %726 = vst [vmem:[#allocation8] sm:$0xff] %v724_v20 }
 0x43e   :  { %921 = shalt.err (!%p918_p10)
}
 0x43f   :  { %s922_s16 = scalar_lea.hbm %s1259_s7, 128 }
 0x440   :  { %p923_p11 = scmp.ne.s32.totalorder %s1259_s7, %s922_s16  ;;  %p926_p12 = scmp.lt.u32.totalorder %s922_s16, %s1259_s7 }
 0x442   :  { %p928_p13 = pnand %p926_p12, %p923_p11 }
 0x444   :  { %931 = shalt.err (!%p928_p13)
}
 0x445   :  { %736 = dma.vmem_to_hbm [thread:$0]  %s734_s11, 128, %s1259_s7, [#allocation9]  }
 0x446   :  { %938 = dma.done.wait [#allocation9], 128  }
 0x447   :  { %939 = vsyncadd [#allocation9], 4294967168 }
 0x448   :  { %740 = vsyncpa [#allocation9], 1 }

</bundles_post_ra>
